<compile_context>
chip_gen: v6e
topology: v6e:2x2x1
jax: 0.10.0
libtpu: 0.0.40
codegen_flags: <defaults>
</compile_context>

<pallas_src>
import jax
import jax.numpy as jnp
from jax.experimental import pallas as pl
from jax.experimental.pallas import tpu as pltpu

STATE_DIM = 64
HIDDEN = 256


def _round_up(x, m):
    return ((x + m - 1) // m) * m


def _reward_mlp_kernel(x_ref, w1_ref, b1_ref, w2_ref, b2_ref, w3_ref, b3_ref, o_ref):
    # Layer 1: MXU matmul, bf16 operands, f32 accumulation; bias/ReLU in f32.
    x = x_ref[...]                                                        # [T, D] bf16
    h1 = jnp.dot(x, w1_ref[...], preferred_element_type=jnp.float32) + b1_ref[...]
    h1 = jnp.maximum(h1, 0.0).astype(jnp.bfloat16)                        # [T, H] bf16
    # Layer 2: MXU matmul, bf16 operands, f32 accumulation.
    h2 = jnp.dot(h1, w2_ref[...], preferred_element_type=jnp.float32) + b2_ref[...]
    h2 = jnp.maximum(h2, 0.0)                                             # [T, H] f32
    # Layer 3 (K=H, N=1): VPU multiply + lane reduction keeps the MXU free
    # (an N=1 matmul would burn a full MXU pass for 1/256 of the columns).
    r = jnp.sum(h2 * w3_ref[...], axis=-1, keepdims=True)                 # [T, 1] f32
    o_ref[...] = (r + b3_ref[...]).astype(o_ref.dtype)


def reward_network_forward(state, params, *, batch_tile=512):
    """state: [B, STATE_DIM] float32 -> reward: [B, 1] float32."""
    w1, b1, w2, b2, w3, b3 = params
    B, D = state.shape
    H = w1.shape[1]
    assert D == w1.shape[0]

    # Actual tile: multiple of 16 (bf16 sublane packing), shrunk for small B.
    tile = max(16, min(batch_tile, _round_up(B, 16)))
    tile = _round_up(tile, 16)
    B_pad = _round_up(B, tile)        # pad ragged batches, slice the tail off after
    grid = (B_pad // tile,)

    # bf16 operands for the two MXU layers; accumulation stays f32 in-kernel.
    # (Storing params as bf16 would also avoid the per-call cast.)
    x_bf = jnp.pad(state, ((0, B_pad - B), (0, 0))).astype(jnp.bfloat16)
    w1_bf = w1.astype(jnp.bfloat16)
    w2_bf = w2.astype(jnp.bfloat16)
    b1_f = b1.reshape(1, H).astype(jnp.float32)
    b2_f = b2.reshape(1, H).astype(jnp.float32)
    w3_row = w3.reshape(1, H).astype(jnp.float32)   # lane-dense row for the VPU reduce
    b3_f = b3.reshape(1, 1).astype(jnp.float32)

    # Weights/biases (< 200 KiB) are given in full to every grid step; only the
    # batch axis is tiled/pipelined.
    full = lambda shape: pl.BlockSpec(shape, lambda i: (0, 0))

    flops = 2 * B_pad * (D * H + H * H + H)
    bytes_accessed = (
        x_bf.size * 2 + w1_bf.size * 2 + w2_bf.size * 2
        + (b1_f.size + b2_f.size + w3_row.size + b3_f.size) * 4
        + B_pad * 4
    )

    out = pl.pallas_call(
        _reward_mlp_kernel,
        out_shape=jax.ShapeDtypeStruct((B_pad, 1), jnp.float32),
        grid_spec=pltpu.PrefetchScalarGridSpec(
            num_scalar_prefetch=0,
            grid=grid,
            in_specs=[
                pl.BlockSpec((tile, D), lambda i: (i, 0)),   # state tile (pipelined)
                full(w1_bf.shape), full(b1_f.shape),
                full(w2_bf.shape), full(b2_f.shape),
                full(w3_row.shape), full(b3_f.shape),
            ],
            out_specs=pl.BlockSpec((tile, 1), lambda i: (i, 0)),
        ),
        compiler_params=pltpu.CompilerParams(
            dimension_semantics=("parallel",),
        ),
        cost_estimate=pl.CostEstimate(
            flops=flops, transcendentals=0, bytes_accessed=bytes_accessed),
    )(x_bf, w1_bf, b1_f, w2_bf, b2_f, w3_row, b3_f)

    return out[:B]


def init_params(key, state_dim=STATE_DIM, hidden=HIDDEN):
    """Deterministic init mimicking PyTorch nn.Linear (uniform +-1/sqrt(fan_in)).
    Weights returned as [in, out]; biases as [1, out]."""
    def linear_init(k, fan_in, fan_out):
        kw, kb = jax.random.split(k)
        bound = 1.0 / jnp.sqrt(float(fan_in))
        w = jax.random.uniform(kw, (fan_in, fan_out), jnp.float32, -bound, bound)
        b = jax.random.uniform(kb, (1, fan_out), jnp.float32, -bound, bound)
        return w, b

    k1, k2, k3 = jax.random.split(key, 3)
    w1, b1 = linear_init(k1, state_dim, hidden)
    w2, b2 = linear_init(k2, hidden, hidden)
    w3, b3 = linear_init(k3, hidden, 1)
    return (w1, b1, w2, b2, w3, b3)


def reference_forward(state, params):
    w1, b1, w2, b2, w3, b3 = params
    h1 = jnp.maximum(state @ w1 + b1, 0.0)
    h2 = jnp.maximum(h1 @ w2 + b2, 0.0)
    return h2 @ w3 + b3


if __name__ == "__main__":
    key = jax.random.PRNGKey(0)
    kp, kx = jax.random.split(key)
    params = init_params(kp)

    # Small demo batch (single grid step, tile shrunk to 16).
    batch = 8
    state = jax.random.normal(kx, (batch, STATE_DIM), jnp.float32)
    out = jax.block_until_ready(reward_network_forward(state, params))
    ref = reference_forward(state, params)
    assert out.shape == (batch, 1), out.shape
    err = float(jnp.max(jnp.abs(out - ref)))
    # bf16 MXU operands with f32 accumulation -> looser tolerance than pure f32.
    assert err < 2e-2, err

    # Ragged batch exercising the multi-step pipelined path (grid > 1, padding).
    batch2 = 700
    state2 = jax.random.normal(jax.random.PRNGKey(1), (batch2, STATE_DIM), jnp.float32)
    out2 = jax.block_until_ready(
        reward_network_forward(state2, params, batch_tile=256))
    ref2 = reference_forward(state2, params)
    assert out2.shape == (batch2, 1), out2.shape
    err2 = float(jnp.max(jnp.abs(out2 - ref2)))
    assert err2 < 2e-2, err2

    print("KERNEL_OK")
</pallas_src>

<mosaic_0001>
module attributes {stable_mosaic.version = 11 : i64} {
  func.func @_reward_mlp_kernel(%arg0: i32, %arg1: memref<16x64xbf16, #tpu.memory_space<vmem>>, %arg2: memref<64x256xbf16, #tpu.memory_space<vmem>>, %arg3: memref<1x256xf32, #tpu.memory_space<vmem>>, %arg4: memref<256x256xbf16, #tpu.memory_space<vmem>>, %arg5: memref<1x256xf32, #tpu.memory_space<vmem>>, %arg6: memref<1x256xf32, #tpu.memory_space<vmem>>, %arg7: memref<1x1xf32, #tpu.memory_space<vmem>>, %arg8: memref<16x1xf32, #tpu.memory_space<vmem>>) attributes {dimension_semantics = [#tpu.dimension_semantics<parallel>], iteration_bounds = array<i64: 1>, scalar_prefetch = 0 : i64, scratch_operands = 0 : i64, tpu.core_type = #tpu.core_type<tc>, window_params = [{transform_indices = @transform_0, window_bounds = array<i64: 16, 64>}, {pipeline_mode = #tpu.pipeline_mode<synchronous>, transform_indices = @transform_1, window_bounds = array<i64: 64, 256>}, {pipeline_mode = #tpu.pipeline_mode<synchronous>, transform_indices = @transform_2, window_bounds = array<i64: 1, 256>}, {pipeline_mode = #tpu.pipeline_mode<synchronous>, transform_indices = @transform_3, window_bounds = array<i64: 256, 256>}, {pipeline_mode = #tpu.pipeline_mode<synchronous>, transform_indices = @transform_4, window_bounds = array<i64: 1, 256>}, {pipeline_mode = #tpu.pipeline_mode<synchronous>, transform_indices = @transform_5, window_bounds = array<i64: 1, 256>}, {pipeline_mode = #tpu.pipeline_mode<synchronous>, transform_indices = @transform_6, window_bounds = array<i64: 1, 1>}, {transform_indices = @transform_7, window_bounds = array<i64: 16, 1>}]} {
    %c0 = arith.constant 0 : index
    %c0_0 = arith.constant 0 : index
    %0 = vector.load %arg1[%c0, %c0_0] : memref<16x64xbf16, #tpu.memory_space<vmem>>, vector<16x64xbf16>
    %c0_1 = arith.constant 0 : index
    %c0_2 = arith.constant 0 : index
    %1 = vector.load %arg2[%c0_1, %c0_2] : memref<64x256xbf16, #tpu.memory_space<vmem>>, vector<64x256xbf16>
    %cst = arith.constant dense<0.000000e+00> : vector<16x256xf32>
    %2 = tpu.matmul %0, %1, %cst {dimension_numbers = #tpu.dot_dimension_numbers<[1], [0], [0], [1], [0, 0, 1, 1], [], []>} : vector<16x64xbf16>, vector<64x256xbf16>, vector<16x256xf32> -> vector<16x256xf32>
    %c0_3 = arith.constant 0 : index
    %c0_4 = arith.constant 0 : index
    %3 = vector.load %arg3[%c0_3, %c0_4] : memref<1x256xf32, #tpu.memory_space<vmem>>, vector<1x256xf32>
    %4 = vector.broadcast %3 : vector<1x256xf32> to vector<16x256xf32>
    %5 = arith.addf %2, %4 : vector<16x256xf32>
    %cst_5 = arith.constant 0.000000e+00 : f32
    %6 = vector.broadcast %cst_5 : f32 to vector<16x256xf32>
    %7 = arith.maximumf %5, %6 : vector<16x256xf32>
    %8 = arith.truncf %7 : vector<16x256xf32> to vector<16x256xbf16>
    %c0_6 = arith.constant 0 : index
    %c0_7 = arith.constant 0 : index
    %9 = vector.load %arg4[%c0_6, %c0_7] : memref<256x256xbf16, #tpu.memory_space<vmem>>, vector<256x256xbf16>
    %cst_8 = arith.constant dense<0.000000e+00> : vector<16x256xf32>
    %10 = tpu.matmul %8, %9, %cst_8 {dimension_numbers = #tpu.dot_dimension_numbers<[1], [0], [0], [1], [0, 0, 1, 1], [], []>} : vector<16x256xbf16>, vector<256x256xbf16>, vector<16x256xf32> -> vector<16x256xf32>
    %c0_9 = arith.constant 0 : index
    %c0_10 = arith.constant 0 : index
    %11 = vector.load %arg5[%c0_9, %c0_10] : memref<1x256xf32, #tpu.memory_space<vmem>>, vector<1x256xf32>
    %12 = vector.broadcast %11 : vector<1x256xf32> to vector<16x256xf32>
    %13 = arith.addf %10, %12 : vector<16x256xf32>
    %cst_11 = arith.constant 0.000000e+00 : f32
    %14 = vector.broadcast %cst_11 : f32 to vector<16x256xf32>
    %15 = arith.maximumf %13, %14 : vector<16x256xf32>
    %c0_12 = arith.constant 0 : index
    %c0_13 = arith.constant 0 : index
    %16 = vector.load %arg6[%c0_12, %c0_13] : memref<1x256xf32, #tpu.memory_space<vmem>>, vector<1x256xf32>
    %17 = vector.broadcast %16 : vector<1x256xf32> to vector<16x256xf32>
    %18 = arith.mulf %15, %17 : vector<16x256xf32>
    %cst_14 = arith.constant dense<0.000000e+00> : vector<16xf32>
    %19 = vector.multi_reduction <add>, %18, %cst_14 [1] : vector<16x256xf32> to vector<16xf32>
    %20 = vector.shape_cast %19 : vector<16xf32> to vector<16x1xf32>
    %c0_15 = arith.constant 0 : index
    %c0_16 = arith.constant 0 : index
    %21 = vector.load %arg7[%c0_15, %c0_16] : memref<1x1xf32, #tpu.memory_space<vmem>>, vector<1x1xf32>
    %22 = vector.broadcast %21 : vector<1x1xf32> to vector<16x1xf32>
    %23 = arith.addf %20, %22 : vector<16x1xf32>
    %c0_17 = arith.constant 0 : index
    %c0_18 = arith.constant 0 : index
    %24 = vector.load %arg8[%c0_17, %c0_18] : memref<16x1xf32, #tpu.memory_space<vmem>>, vector<16x1xf32>
    tpu.vector_store %arg8[%c0_17, %c0_18], %23 {strides = array<i32>} : memref<16x1xf32, #tpu.memory_space<vmem>>, vector<16x1xf32>,
    return
  }
  func.func @transform_0(%arg0: i32) -> (i32, i32) {
    %c0_i32 = arith.constant 0 : i32
    %c0_i32_0 = arith.constant 0 : i32
    return %arg0, %c0_i32 : i32, i32
  }
  func.func @transform_1(%arg0: i32) -> (i32, i32) {
    %c0_i32 = arith.constant 0 : i32
    %c0_i32_0 = arith.constant 0 : i32
    %c0_i32_1 = arith.constant 0 : i32
    return %c0_i32, %c0_i32_0 : i32, i32
  }
  func.func @transform_2(%arg0: i32) -> (i32, i32) {
    %c0_i32 = arith.constant 0 : i32
    %c0_i32_0 = arith.constant 0 : i32
    %c0_i32_1 = arith.constant 0 : i32
    return %c0_i32, %c0_i32_0 : i32, i32
  }
  func.func @transform_3(%arg0: i32) -> (i32, i32) {
    %c0_i32 = arith.constant 0 : i32
    %c0_i32_0 = arith.constant 0 : i32
    %c0_i32_1 = arith.constant 0 : i32
    return %c0_i32, %c0_i32_0 : i32, i32
  }
  func.func @transform_4(%arg0: i32) -> (i32, i32) {
    %c0_i32 = arith.constant 0 : i32
    %c0_i32_0 = arith.constant 0 : i32
    %c0_i32_1 = arith.constant 0 : i32
    return %c0_i32, %c0_i32_0 : i32, i32
  }
  func.func @transform_5(%arg0: i32) -> (i32, i32) {
    %c0_i32 = arith.constant 0 : i32
    %c0_i32_0 = arith.constant 0 : i32
    %c0_i32_1 = arith.constant 0 : i32
    return %c0_i32, %c0_i32_0 : i32, i32
  }
  func.func @transform_6(%arg0: i32) -> (i32, i32) {
    %c0_i32 = arith.constant 0 : i32
    %c0_i32_0 = arith.constant 0 : i32
    %c0_i32_1 = arith.constant 0 : i32
    return %c0_i32, %c0_i32_0 : i32, i32
  }
  func.func @transform_7(%arg0: i32) -> (i32, i32) {
    %c0_i32 = arith.constant 0 : i32
    %c0_i32_0 = arith.constant 0 : i32
    return %arg0, %c0_i32 : i32, i32
  }
}

</mosaic_0001>

<bundles_post_ra>
// kernel: tpu_custom_call.1
= control target key start
LH: loop header
LB: loop body
LE: loop exit
PB: predicated region body
PF: predicated region fallthrough
CT: control target
= control target key end

     0   :  { %s732_s0 = inlined_call_operand.hbm [shape: bf16[16,64], index: 0, kind: input, shape index: {}]   ;;  %s733_s1 = inlined_call_operand.hbm [shape: bf16[64,256], index: 1, kind: input, shape index: {}]   ;;  %s734_s2 = inlined_call_operand.vmem [shape: f32[1,256], index: 2, kind: input, shape index: {}]   ;;  %s735_s3 = inlined_call_operand.hbm [shape: bf16[256,256], index: 3, kind: input, shape index: {}]   ;;  %s736_s4 = inlined_call_operand.vmem [shape: f32[1,256], index: 4, kind: input, shape index: {}]   ;;  %s737_s5 = inlined_call_operand.vmem [shape: f32[1,256], index: 5, kind: input, shape index: {}]   ;;  %s738_s6 = inlined_call_operand.<no memory space> [shape: f32[1,1], index: 6, kind: input, shape index: {}]   ;;  %s739_s7 = inlined_call_operand.vmem [shape: f32[16,1], index: 7, kind: output, shape index: {}]  }
   0x1   :  { %v12_v0 = vstv %s738_s6 }
   0x2   :  { %13 = vst [vmem:[#allocation2] sm:$0x1] %v12_v0 }
   0x3   :  { %14 = vsyncpa [#allocation4], 0 }
   0x4   :  { %15 = vsyncpa [#allocation6], 0  ;;  %s657_s26 = smov [#allocation5]  }
   0x5   :  { %s33_s27 = sshll.u32 %s657_s26, 4  ;;  %s34_s27 = int_to_ptr.vmem [resolvable:$true] %s33_s27 }
   0x6   :  { %s601_s28 = scalar_lea.vmem %s34_s27, 1024  ;;  %p606_p1 = scmp.lt.s32.totalorder %s34_s27, %s34_s27 }
   0x7   :  { %p602_p0 = scmp.ne.s32.totalorder %s34_s27, %s601_s28  ;;  %p607_p2 = scmp.lt.s32.totalorder %s601_s28, %s601_s28 }
   0x9   :  { %p608_p3 = por %p607_p2, %p606_p1 }
   0xb   :  { %p609_p4 = pnand %p608_p3, %p602_p0 }
   0xd   :  { %612 = shalt.err (!%p609_p4)
}
   0xe   :  { %s658_s29 = smov 128   ;;  %s659_s30 = smov 8  }
   0xf   :  { %39 = dma.hbm_to_vmem [thread:$0]  %s733_s1, 1024, %s34_s27, [#allocation6], %s658_s29, %s658_s29, %s659_s30  }
  0x10   :  { %s660_s6 = smov [#allocation3]  }
  0x11   :  { %s21_s10 = sshll.u32 %s660_s6, 4  ;;  %s22_s10 = int_to_ptr.vmem [resolvable:$true] %s21_s10 }
  0x12   :  { %s621_s11 = scalar_lea.vmem %s22_s10, 128  ;;  %p626_p6 = scmp.lt.s32.totalorder %s22_s10, %s22_s10 }
  0x13   :  { %p622_p5 = scmp.ne.s32.totalorder %s22_s10, %s621_s11  ;;  %p627_p7 = scmp.lt.s32.totalorder %s621_s11, %s621_s11 }
  0x15   :  { %p628_p8 = por %p627_p7, %p626_p6 }
  0x17   :  { %p629_p9 = pnand %p628_p8, %p622_p5 }
  0x19   :  { %632 = shalt.err (!%p629_p9)
}
  0x1a   :  { %s661_s12 = smov 64   ;;  %s662_s13 = smov 4  }
  0x1b   :  { %27 = dma.hbm_to_vmem [thread:$0]  %s732_s0, 128, %s22_s10, [#allocation4], %s661_s12, %s661_s12, %s662_s13  }
  0x1c   :  { %s663_s16 = smov [#allocation7]  }
  0x1d   :  { %s47_s17 = sshll.u32 %s663_s16, 4  ;;  %s48_s17 = int_to_ptr.vmem [resolvable:$true] %s47_s17 }
  0x1e   :  { %s641_s1 = scalar_lea.vmem %s48_s17, 4096  ;;  %p646_p11 = scmp.lt.s32.totalorder %s48_s17, %s48_s17 }
  0x1f   :  { %p642_p10 = scmp.ne.s32.totalorder %s48_s17, %s641_s1  ;;  %p647_p12 = scmp.lt.s32.totalorder %s641_s1, %s641_s1 }
  0x21   :  { %p648_p13 = por %p647_p12, %p646_p11 }
  0x23   :  { %p649_p0 = pnand %p648_p13, %p642_p10 }
  0x25   :  { %652 = shalt.err (!%p649_p0)
}
  0x26   :  { %53 = dma.hbm_to_vmem [thread:$0]  %s735_s3, 4096, %s48_s17, [#allocation6], %s658_s29, %s658_s29, %s659_s30  }
  0x27   :  { %653 = dma.done.wait [#allocation4], 128  }
  0x28   :  { %654 = vsyncadd [#allocation4], 4294967168 }
  0x29   :  { %655 = dma.done.wait [#allocation6], 5120  }
  0x2a   :  { %656 = vsyncadd [#allocation6], 4294962176  ;;  %v664_v1 = vmov 0   ;;  %v532_v2 = vld [vmem:[#allocation5 + $0x34] ss:$8 sps:$4 sm:$0xff]   ;;  %vm137_vm0 = vcmask 523264   ;;  %v82_v43 = vlaneseq }
  0x2b   :  { %173 = vmatprep.mubr.bf16.mxu0 %v664_v1  ;;  %v534_v3 = vld [vmem:[#allocation5 + $0x30] ss:$8 sps:$4 sm:$0xff]   ;;  %149 = vmatprep.subr.bf16.mxu0 %v532_v2  ;;  %v535_v4 = vld [vmem:[#allocation5 + $0x24] ss:$8 sps:$4 sm:$0xff]   ;;  %v537_v5 = vld [vmem:[#allocation5 + $0x20] ss:$8 sps:$4 sm:$0xff]  }
  0x2c   :  { %150 = vmatpush1.bf16.msra.mxu0 %v534_v3  ;;  %v538_v6 = vld [vmem:[#allocation5 + $0x14] ss:$8 sps:$4 sm:$0xff]   ;;  %v540_v7 = vld [vmem:[#allocation5 + $0x10] ss:$8 sps:$4 sm:$0xff]   ;;  %v541_v10 = vld [vmem:[#allocation5 + $0x4] ss:$8 sps:$4 sm:$0xff]  }
  0x2d   :  { %151 = vmatprep.subr.bf16.mxu0 %v535_v4  ;;  %v545_v8 = vld [vmem:[#allocation7 + $0x74] ss:$8 sps:$4 sm:$0xff]   ;;  %v547_v9 = vld [vmem:[#allocation7 + $0x70] ss:$8 sps:$4 sm:$0xff]   ;;  %v548_v11 = vld [vmem:[#allocation7 + $0x64] ss:$8 sps:$4 sm:$0xff]  }
  0x2e   :  { %394 = vmatprep.subr.bf16.mxu1 %v545_v8  ;;  %v550_v12 = vld [vmem:[#allocation7 + $0x60] ss:$8 sps:$4 sm:$0xff]   ;;  %v551_v14 = vld [vmem:[#allocation7 + $0x54] ss:$8 sps:$4 sm:$0xff]   ;;  %v553_v16 = vld [vmem:[#allocation7 + $0x50] ss:$8 sps:$4 sm:$0xff]  }
  0x2f   :  { %395 = vmatpush1.bf16.msra.mxu1 %v547_v9  ;;  %v543_v13 = vld [vmem:[#allocation5] ss:$8 sps:$4 sm:$0xff]   ;;  %v544_v15 = vld [vmem:[#allocation3] sm:$0xff]   ;;  %v554_v17 = vld [vmem:[#allocation7 + $0x44] ss:$8 sps:$4 sm:$0xff]   ;;  %v83_v44 = vshrl.u32 %v82_v43, 7 }
  0x30   :  { %152 = vmatpush1.bf16.msra.mxu0 %v537_v5  ;;  %396 = vmatprep.subr.bf16.mxu1 %v548_v11  ;;  %v556_v18 = vld [vmem:[#allocation7 + $0x40] ss:$8 sps:$4 sm:$0xff]   ;;  %v557_v19 = vld [vmem:[#allocation7 + $0x34] ss:$8 sps:$4 sm:$0xff]   ;;  %v559_v20 = vld [vmem:[#allocation7 + $0x30] ss:$8 sps:$4 sm:$0xff]  }
  0x31   :  { %153 = vmatprep.subr.bf16.mxu0 %v538_v6  ;;  %v560_v21 = vld [vmem:[#allocation7 + $0x24] ss:$8 sps:$4 sm:$0xff]   ;;  %v562_v22 = vld [vmem:[#allocation7 + $0x20] ss:$8 sps:$4 sm:$0xff]   ;;  %v563_v23 = vld [vmem:[#allocation7 + $0x14] ss:$8 sps:$4 sm:$0xff]  }
  0x32   :  { %v565_v24 = vld [vmem:[#allocation7 + $0x10] ss:$8 sps:$4 sm:$0xff]   ;;  %v566_v25 = vld [vmem:[#allocation7 + $0x4] ss:$8 sps:$4 sm:$0xff]   ;;  %v568_v26 = vld [vmem:[#allocation7] ss:$8 sps:$4 sm:$0xff]  }
  0x33   :  { %397 = vmatpush1.bf16.msra.mxu1 %v550_v12  ;;  %v569_v27 = vld [vmem:[#allocation7 + $0xf4] ss:$8 sps:$4 sm:$0xff]   ;;  %v571_v28 = vld [vmem:[#allocation7 + $0xf0] ss:$8 sps:$4 sm:$0xff]   ;;  %v572_v29 = vld [vmem:[#allocation7 + $0xe4] ss:$8 sps:$4 sm:$0xff]  }
  0x34   :  { %154 = vmatpush1.bf16.msra.mxu0 %v540_v7  ;;  %398 = vmatprep.subr.bf16.mxu1 %v551_v14  ;;  %v574_v30 = vld [vmem:[#allocation7 + $0xe0] ss:$8 sps:$4 sm:$0xff]   ;;  %v575_v31 = vld [vmem:[#allocation7 + $0xd4] ss:$8 sps:$4 sm:$0xff]   ;;  %v577_v32 = vld [vmem:[#allocation7 + $0xd0] ss:$8 sps:$4 sm:$0xff]  }
  0x35   :  { %155 = vmatprep.subr.bf16.mxu0 %v541_v10  ;;  %v578_v33 = vld [vmem:[#allocation7 + $0xc4] ss:$8 sps:$4 sm:$0xff]   ;;  %v580_v34 = vld [vmem:[#allocation7 + $0xc0] ss:$8 sps:$4 sm:$0xff]   ;;  %v581_v35 = vld [vmem:[#allocation7 + $0xb4] ss:$8 sps:$4 sm:$0xff]  }
  0x36   :  { %v583_v36 = vld [vmem:[#allocation7 + $0xb0] ss:$8 sps:$4 sm:$0xff]   ;;  %v584_v37 = vld [vmem:[#allocation7 + $0xa4] ss:$8 sps:$4 sm:$0xff]   ;;  %v586_v38 = vld [vmem:[#allocation7 + $0xa0] ss:$8 sps:$4 sm:$0xff]  }
  0x37   :  { %399 = vmatpush1.bf16.msra.mxu1 %v553_v16  ;;  %v587_v39 = vld [vmem:[#allocation7 + $0x94] ss:$8 sps:$4 sm:$0xff]   ;;  %v589_v40 = vld [vmem:[#allocation7 + $0x90] ss:$8 sps:$4 sm:$0xff]   ;;  %v590_v41 = vld [vmem:[#allocation7 + $0x84] ss:$8 sps:$4 sm:$0xff]  }
  0x38   :  { %156 = vmatpush1.bf16.msra.mxu0 %v543_v13  ;;  %400 = vmatprep.subr.bf16.mxu1 %v554_v17  ;;  %v592_v42 = vld [vmem:[#allocation7 + $0x80] ss:$8 sps:$4 sm:$0xff]   ;;  %v88_v45 = vsub.s32 1, %v83_v44  ;;  %v84_v46 = vsub.s32 0, %v83_v44  ;;  %v80_v47 = vld [vmem:[%s734_s2] sm:$0x3] }
  0x39   :  { %v222_v0 = vld [vmem:[%s736_s4] sm:$0x3]  ;;  %vm472_vm1 = vcmask 7168  }
  0x3a   :  { %v89_v49 = vrot.slane %v80_v47, %v88_v45  ;;  %v85_v50 = vrot.slane %v80_v47, %v84_v46  ;;  %v227_v1 = vrot.slane %v222_v0, %v84_v46  ;;  %v231_v2 = vrot.slane %v222_v0, %v88_v45  ;;  %v441_v4 = vld [vmem:[%s737_s5] sm:$0x3] }
  0x3b   :  { %490 = vmatmul.mubr.msk.bf16.vlgmr.msra.gmra.mxu0 %vm137_vm0, %v544_v15  ;;  %401 = vmatpush1.bf16.msra.mxu1 %v556_v18  ;;  %v446_v9 = vrot.slane %v441_v4, %v84_v46  ;;  %v450_v10 = vrot.slane %v441_v4, %v88_v45 }
  0x3c   :  { %402 = vmatprep.subr.bf16.mxu1 %v557_v19 }
  0x3f   :  { %403 = vmatpush1.bf16.msra.mxu1 %v559_v20 }
  0x40   :  { %404 = vmatprep.subr.bf16.mxu1 %v560_v21 }
  0x43   :  { %405 = vmatpush1.bf16.msra.mxu1 %v562_v22 }
  0x44   :  { %406 = vmatprep.subr.bf16.mxu1 %v563_v23 }
  0x47   :  { %407 = vmatpush1.bf16.msra.mxu1 %v565_v24  ;;  %v523_v24 = vld [vmem:[#allocation2] ss:$0 sm:$0xff] }
  0x48   :  { %408 = vmatprep.subr.bf16.mxu1 %v566_v25 }
  0x4b   :  { %409 = vmatpush1.bf16.msra.mxu1 %v568_v26 }
  0x4c   :  { %410 = vmatprep.subr.bf16.mxu1 %v569_v27 }
  0x4f   :  { %411 = vmatpush2.bf16.msra.mxu1 %v571_v28 }
  0x50   :  { %412 = vmatprep.subr.bf16.mxu1 %v572_v29 }
  0x53   :  { %413 = vmatpush2.bf16.msra.mxu1 %v574_v30 }
  0x54   :  { %414 = vmatprep.subr.bf16.mxu1 %v575_v31 }
  0x57   :  { %415 = vmatpush2.bf16.msra.mxu1 %v577_v32 }
  0x58   :  { %416 = vmatprep.subr.bf16.mxu1 %v578_v33 }
  0x5b   :  { %417 = vmatpush2.bf16.msra.mxu1 %v580_v34 }
  0x5c   :  { %418 = vmatprep.subr.bf16.mxu1 %v581_v35 }
  0x5f   :  { %419 = vmatpush2.bf16.msra.mxu1 %v583_v36 }
  0x60   :  { %420 = vmatprep.subr.bf16.mxu1 %v584_v37 }
  0x63   :  { %421 = vmatpush2.bf16.msra.mxu1 %v586_v38 }
  0x64   :  { %422 = vmatprep.subr.bf16.mxu1 %v587_v39 }
  0x67   :  { %423 = vmatpush2.bf16.msra.mxu1 %v589_v40 }
  0x68   :  { %424 = vmatprep.subr.bf16.mxu1 %v590_v41 }
  0x6b   :  { %425 = vmatpush2.bf16.msra.mxu1 %v592_v42 }
  0xfb   :  { %v175_v48 = vpop.f32.mrf.mxu0 }
  0xfc   :  { %v176_v55 = vadd.f32 %v175_v48, %v85_v50 }
  0xfd   :  { %v177_v51 = vpop.f32.mrf.mxu0 }
  0xfe   :  { %v178_v53 = vadd.f32 %v177_v51, %v89_v49  ;;  %v184_v61 = vmax.f32 %v176_v55, 0.0 }
  0xff   :  { %v179_v52 = vpop.f32.mrf.mxu0 }
 0x100   :  { %v180_v54 = vadd.f32 %v179_v52, %v85_v50  ;;  %v185_v59 = vmax.f32 %v178_v53, 0.0 }
 0x101   :  { %v181_v56 = vpop.f32.mrf.mxu0 }
 0x102   :  { %v182_v57 = vadd.f32 %v181_v56, %v89_v49  ;;  %v186_v58 = vmax.f32 %v180_v54, 0.0 }
 0x104   :  { %v187_v60 = vmax.f32 %v182_v57, 0.0  ;;  %v188_v63 = vpack.c.bf16 %v186_v58, %v184_v61 }
 0x106   :  { %v189_v62 = vpack.c.bf16 %v187_v60, %v185_v59 }
 0x108   :  { %426 = vmatprep.mubr.bf16.mxu1 %v189_v62 }
 0x109   :  { %427 = vmatmul.mubr.bf16.vlgmr.msra.gmra.mxu1 %v188_v63 }
 0x1c9   :  { %v428_v3 = vpop.f32.mrf.mxu1 }
 0x1ca   :  { %v429_v5 = vadd.f32 %v428_v3, %v227_v1 }
 0x1cb   :  { %v430_v6 = vpop.f32.mrf.mxu1 }
 0x1cc   :  { %v437_v7 = vmax.f32 %v429_v5, 0.0  ;;  %v431_v8 = vadd.f32 %v430_v6, %v231_v2 }
 0x1cd   :  { %v432_v11 = vpop.f32.mrf.mxu1 }
 0x1ce   :  { %v438_v12 = vmax.f32 %v431_v8, 0.0  ;;  %v433_v13 = vadd.f32 %v432_v11, %v227_v1  ;;  %v453_v17 = vmul.f32 %v446_v9, %v437_v7 }
 0x1cf   :  { %v434_v14 = vpop.f32.mrf.mxu1 }
 0x1d0   :  { %v439_v15 = vmax.f32 %v433_v13, 0.0  ;;  %v435_v16 = vadd.f32 %v434_v14, %v231_v2  ;;  %v454_v18 = vmul.f32 %v450_v10, %v438_v12 }
 0x1d2   :  { %v440_v19 = vmax.f32 %v435_v16, 0.0  ;;  %v457_v20 = vadd.f32 %v454_v18, %v453_v17  ;;  %v455_v21 = vmul.f32 %v446_v9, %v439_v15 }
 0x1d4   :  { %v456_v22 = vmul.f32 %v450_v10, %v440_v19  ;;  %458 = vadd.xlane.f32.xlu0 %v457_v20 }
 0x1d6   :  { %v460_v23 = vadd.f32 %v456_v22, %v455_v21 }
 0x1d8   :  { %461 = vadd.xlane.f32.xlu0 %v460_v23 }
 0x25d   :  { %v459_v25 = vpop.xlane.xlu0 %458 }
 0x25e   :  { %v470_v26 = vadd.f32 %v523_v24, %v459_v25 }
 0x260   :  { %473 = vst.msk [vmem:[%s739_s7] sm:$0xff] %vm472_vm1, %v470_v26 }
 0x261   :  { %v462_v27 = vpop.xlane.xlu0 %461 }
 0x262   :  { %v471_v28 = vadd.f32 %v523_v24, %v462_v27 }
 0x264   :  { %474 = vst.msk [vmem:[%s739_s7 + $0x8] sm:$0xff] %vm472_vm1, %v471_v28 }
 0x265   :  { %479 = vsyncpa [#allocation4], 1 }
 0x266   :  { %480 = vsyncpa [#allocation6], 1 }

</bundles_post_ra>
